<compile_context>
chip_gen: v7x
topology: tpu7x:2x2x1
jax: 0.10.0
libtpu: 0.0.40
codegen_flags: <defaults>
</compile_context>

<pallas_src>
import functools

import jax
import jax.numpy as jnp
from jax import lax
from jax.experimental import pallas as pl
from jax.experimental.pallas import tpu as pltpu

H1 = 128    # fc1 output width
H2 = 64     # fc3 output width (logical)
H2P = 128   # fc3 output width padded to a full lane group


def _fallback_bits(shape, seed_u, pid_u, salt):
    """Counter-hash random bits for non-TPU backends (interpret-mode parity).
    One mixing round; only the LSB of each 32-bit word is consumed."""
    rows = lax.broadcasted_iota(jnp.int32, shape, 0).astype(jnp.uint32)
    cols = lax.broadcasted_iota(jnp.int32, shape, 1).astype(jnp.uint32)
    base = (seed_u * jnp.uint32(0x85EBCA6B)
            + pid_u * jnp.uint32(0xC2B2AE35)
            + jnp.uint32(salt))                     # scalar pre-mix
    x = (rows * jnp.uint32(0x9E3779B9)) ^ (cols * jnp.uint32(0x7FEB352D)) ^ base
    x = x ^ (x >> 16)
    x = x * jnp.uint32(0x045D9F3B)
    x = x ^ (x >> 15)
    return x


def qnet_dropout_kernel(seed_ref, x_ref, w1_ref, b1_ref, w3_ref, b3_ref,
                        w5_ref, b5_ref, o_ref, *, use_hw_prng):
    tb = x_ref.shape[0]

    # Random bits: one 32-bit word per (row, lane) per dropout layer.
    # LSB == 0 -> keep (Bernoulli(0.5)).
    if use_hw_prng:
        pltpu.prng_seed(seed_ref[0], pl.program_id(0))
        bits1 = pltpu.prng_random_bits((tb, H1))
        bits2 = pltpu.prng_random_bits((tb, H2P))
    else:
        seed_u = seed_ref[0].astype(jnp.uint32)
        pid_u = pl.program_id(0).astype(jnp.uint32)
        bits1 = _fallback_bits((tb, H1), seed_u, pid_u, 0x243F6A88)
        bits2 = _fallback_bits((tb, H2P), seed_u, pid_u, 0x13198A2E)
    keep1 = (bits1 & 1) == 0
    keep2 = (bits2 & 1) == 0

    # fc1 + ReLU   (bf16 MXU operands, f32 accumulate/elementwise)
    h = jnp.dot(x_ref[...].astype(jnp.bfloat16), w1_ref[...],
                preferred_element_type=jnp.float32) + b1_ref[...]
    h = jnp.maximum(h, 0.0)
    # Dropout(0.5): the 1/(1-p)=2 scale is pre-folded into w3.
    h = jnp.where(keep1, h, 0.0)

    # fc3 + ReLU   (padded to 128 lanes; pad columns are exactly zero)
    h = jnp.dot(h.astype(jnp.bfloat16), w3_ref[...],
                preferred_element_type=jnp.float32) + b3_ref[...]
    h = jnp.maximum(h, 0.0)
    # Dropout(0.5): the 1/(1-p)=2 scale is pre-folded into w5.
    h = jnp.where(keep2, h, 0.0)

    # fc5 -> narrow (tb, action_dim) output stored directly.
    o_ref[...] = (jnp.dot(h.astype(jnp.bfloat16), w5_ref[...],
                          preferred_element_type=jnp.float32)
                  + b5_ref[...]).astype(o_ref.dtype)


def _choose_tile(batch):
    if batch <= 1024:
        return batch                    # single tile; B == full dim is legal
    # >=2 grid steps (keeps both v7x TensorCores busy), <=2048 rows per step,
    # 8-row aligned.  VMEM stays well below the 32 MiB default scoped limit.
    half = -(-batch // 2)
    return min(2048, ((half + 7) // 8) * 8)


def qnet_dropout_forward(x, params, seed, action_dim):
    """x: (B, obs_dim) float32. Returns (B, action_dim) float32 with
    training-mode dropout applied (matching the PyTorch module's forward)."""
    B, obs_dim = x.shape
    assert params["w5"].shape[1] == action_dim

    tb = _choose_tile(B)
    grid = (pl.cdiv(B, tb),)
    seed_arr = jnp.array([seed], dtype=jnp.int32)
    use_hw_prng = jax.default_backend() == "tpu"

    def pinned(shape):
        # Whole array, same block every grid step -> stays VMEM-resident.
        return pl.BlockSpec(shape, lambda i, s: (0, 0))

    grid_spec = pltpu.PrefetchScalarGridSpec(
        num_scalar_prefetch=1,
        grid=grid,
        in_specs=[
            pl.BlockSpec((tb, obs_dim), lambda i, s: (i, 0)),   # x, batch-tiled
            pinned(params["w1"].shape),
            pinned(params["b1"].shape),
            pinned(params["w3"].shape),
            pinned(params["b3"].shape),
            pinned(params["w5"].shape),
            pinned(params["b5"].shape),
        ],
        out_specs=pl.BlockSpec((tb, action_dim), lambda i, s: (i, 0)),
    )

    weight_bytes = sum(int(p.size) * p.dtype.itemsize for p in params.values())
    cost = pl.CostEstimate(
        flops=2 * B * (obs_dim * H1 + H1 * H2P + H2P * action_dim),
        transcendentals=0,
        bytes_accessed=int(x.size) * x.dtype.itemsize
                       + weight_bytes
                       + B * action_dim * 4,
    )

    kernel = functools.partial(qnet_dropout_kernel, use_hw_prng=use_hw_prng)

    return pl.pallas_call(
        kernel,
        out_shape=jax.ShapeDtypeStruct((B, action_dim), jnp.float32),
        grid_spec=grid_spec,
        compiler_params=pltpu.CompilerParams(
            dimension_semantics=("parallel",)),
        cost_estimate=cost,
    )(seed_arr, x, params["w1"], params["b1"], params["w3"], params["b3"],
      params["w5"], params["b5"])


def init_params(key, observation_dim, action_dim):
    """PyTorch nn.Linear default init: U(-1/sqrt(fan_in), 1/sqrt(fan_in)).
    Weights stored (in, out) and cast to bf16; biases stay f32.  The hidden
    width is zero-padded 64 -> 128 and the dropout 2x scale is folded into
    w3 / w5 (both transforms are numerically exact)."""
    def linear(k, fan_in, fan_out):
        kw, kb = jax.random.split(k)
        bound = 1.0 / jnp.sqrt(jnp.float32(fan_in))
        w = jax.random.uniform(kw, (fan_in, fan_out), jnp.float32,
                               minval=-bound, maxval=bound)
        b = jax.random.uniform(kb, (1, fan_out), jnp.float32,
                               minval=-bound, maxval=bound)
        return w, b

    k1, k3, k5 = jax.random.split(key, 3)
    w1, b1 = linear(k1, observation_dim, H1)
    w3, b3 = linear(k3, H1, H2)
    w5, b5 = linear(k5, H2, action_dim)

    # Fold dropout 1/(1-p)=2 scale of the preceding dropout layer into the
    # following linear layer's weights (biases untouched).
    w3 = w3 * 2.0
    w5 = w5 * 2.0

    # Zero-pad hidden width 64 -> 128: zero columns of w3/b3 pass through
    # ReLU/dropout as zeros, and zero rows of w5 contribute nothing.
    w3 = jnp.pad(w3, ((0, 0), (0, H2P - H2)))
    b3 = jnp.pad(b3, ((0, 0), (0, H2P - H2)))
    w5 = jnp.pad(w5, ((0, H2P - H2), (0, 0)))

    return {"w1": w1.astype(jnp.bfloat16), "b1": b1,
            "w3": w3.astype(jnp.bfloat16), "b3": b3,
            "w5": w5.astype(jnp.bfloat16), "b5": b5}


if __name__ == "__main__":
    observation_dim = 37   # Banana env observation size
    action_dim = 4         # Banana env action size
    batch = 8

    key = jax.random.PRNGKey(0)
    k_param, k_x = jax.random.split(key)
    params = init_params(k_param, observation_dim, action_dim)
    x = jax.random.normal(k_x, (batch, observation_dim), dtype=jnp.float32)

    out = qnet_dropout_forward(x, params, seed=0, action_dim=action_dim)
    out = jax.block_until_ready(out)
    assert out.shape == (batch, action_dim)
    assert out.dtype == jnp.float32
    assert bool(jnp.all(jnp.isfinite(out)))
    print("KERNEL_OK")
</pallas_src>

<mosaic_0001>
module attributes {stable_mosaic.version = 11 : i64} {
  func.func @qnet_dropout_kernel(%arg0: i32, %arg1: memref<1xi32, #tpu.memory_space<smem>>, %arg2: memref<8x37xf32, #tpu.memory_space<vmem>>, %arg3: memref<37x128xbf16, #tpu.memory_space<vmem>>, %arg4: memref<1x128xf32, #tpu.memory_space<vmem>>, %arg5: memref<128x128xbf16, #tpu.memory_space<vmem>>, %arg6: memref<1x128xf32, #tpu.memory_space<vmem>>, %arg7: memref<128x4xbf16, #tpu.memory_space<vmem>>, %arg8: memref<1x4xf32, #tpu.memory_space<vmem>>, %arg9: memref<8x4xf32, #tpu.memory_space<vmem>>) attributes {dimension_semantics = [#tpu.dimension_semantics<parallel>], iteration_bounds = array<i64: 1>, scalar_prefetch = 1 : i64, scratch_operands = 0 : i64, tpu.core_type = #tpu.core_type<tc>, window_params = [{transform_indices = @transform_0, window_bounds = array<i64: 8, 37>}, {pipeline_mode = #tpu.pipeline_mode<synchronous>, transform_indices = @transform_1, window_bounds = array<i64: 37, 128>}, {pipeline_mode = #tpu.pipeline_mode<synchronous>, transform_indices = @transform_2, window_bounds = array<i64: 1, 128>}, {pipeline_mode = #tpu.pipeline_mode<synchronous>, transform_indices = @transform_3, window_bounds = array<i64: 128, 128>}, {pipeline_mode = #tpu.pipeline_mode<synchronous>, transform_indices = @transform_4, window_bounds = array<i64: 1, 128>}, {pipeline_mode = #tpu.pipeline_mode<synchronous>, transform_indices = @transform_5, window_bounds = array<i64: 128, 4>}, {pipeline_mode = #tpu.pipeline_mode<synchronous>, transform_indices = @transform_6, window_bounds = array<i64: 1, 4>}, {transform_indices = @transform_7, window_bounds = array<i64: 8, 4>}]} {
    %c0 = arith.constant 0 : index
    %0 = memref.load %arg1[%c0] : memref<1xi32, #tpu.memory_space<smem>>
    %1 = tpu.iota {dimensions = array<i32: 0>} : vector<8x128xi32>
    %2 = tpu.iota {dimensions = array<i32: 1>} : vector<8x128xi32>
    %c-2048144789_i32 = arith.constant -2048144789 : i32
    %3 = arith.muli %0, %c-2048144789_i32 : i32
    %c-1028477387_i32 = arith.constant -1028477387 : i32
    %4 = arith.muli %arg0, %c-1028477387_i32 : i32
    %5 = arith.addi %3, %4 : i32
    %c608135816_i32 = arith.constant 608135816 : i32
    %6 = arith.addi %5, %c608135816_i32 : i32
    %c-1640531527_i32 = arith.constant -1640531527 : i32
    %7 = vector.broadcast %c-1640531527_i32 : i32 to vector<8x128xi32>
    %8 = arith.muli %1, %7 : vector<8x128xi32>
    %c2146121005_i32 = arith.constant 2146121005 : i32
    %9 = vector.broadcast %c2146121005_i32 : i32 to vector<8x128xi32>
    %10 = arith.muli %2, %9 : vector<8x128xi32>
    %11 = arith.xori %8, %10 : vector<8x128xi32>
    %12 = vector.broadcast %6 : i32 to vector<8x128xi32>
    %13 = arith.xori %11, %12 : vector<8x128xi32>
    %c16_i32 = arith.constant 16 : i32
    %14 = vector.broadcast %c16_i32 : i32 to vector<8x128xi32>
    %15 = arith.shrui %13, %14 : vector<8x128xi32>
    %16 = arith.xori %13, %15 : vector<8x128xi32>
    %c73244475_i32 = arith.constant 73244475 : i32
    %17 = vector.broadcast %c73244475_i32 : i32 to vector<8x128xi32>
    %18 = arith.muli %16, %17 : vector<8x128xi32>
    %c15_i32 = arith.constant 15 : i32
    %19 = vector.broadcast %c15_i32 : i32 to vector<8x128xi32>
    %20 = arith.shrui %18, %19 : vector<8x128xi32>
    %21 = arith.xori %18, %20 : vector<8x128xi32>
    %22 = tpu.iota {dimensions = array<i32: 0>} : vector<8x128xi32>
    %23 = tpu.iota {dimensions = array<i32: 1>} : vector<8x128xi32>
    %c-2048144789_i32_0 = arith.constant -2048144789 : i32
    %24 = arith.muli %0, %c-2048144789_i32_0 : i32
    %c-1028477387_i32_1 = arith.constant -1028477387 : i32
    %25 = arith.muli %arg0, %c-1028477387_i32_1 : i32
    %26 = arith.addi %24, %25 : i32
    %c320440878_i32 = arith.constant 320440878 : i32
    %27 = arith.addi %26, %c320440878_i32 : i32
    %c-1640531527_i32_2 = arith.constant -1640531527 : i32
    %28 = vector.broadcast %c-1640531527_i32_2 : i32 to vector<8x128xi32>
    %29 = arith.muli %22, %28 : vector<8x128xi32>
    %c2146121005_i32_3 = arith.constant 2146121005 : i32
    %30 = vector.broadcast %c2146121005_i32_3 : i32 to vector<8x128xi32>
    %31 = arith.muli %23, %30 : vector<8x128xi32>
    %32 = arith.xori %29, %31 : vector<8x128xi32>
    %33 = vector.broadcast %27 : i32 to vector<8x128xi32>
    %34 = arith.xori %32, %33 : vector<8x128xi32>
    %c16_i32_4 = arith.constant 16 : i32
    %35 = vector.broadcast %c16_i32_4 : i32 to vector<8x128xi32>
    %36 = arith.shrui %34, %35 : vector<8x128xi32>
    %37 = arith.xori %34, %36 : vector<8x128xi32>
    %c73244475_i32_5 = arith.constant 73244475 : i32
    %38 = vector.broadcast %c73244475_i32_5 : i32 to vector<8x128xi32>
    %39 = arith.muli %37, %38 : vector<8x128xi32>
    %c15_i32_6 = arith.constant 15 : i32
    %40 = vector.broadcast %c15_i32_6 : i32 to vector<8x128xi32>
    %41 = arith.shrui %39, %40 : vector<8x128xi32>
    %42 = arith.xori %39, %41 : vector<8x128xi32>
    %c1_i32 = arith.constant 1 : i32
    %43 = vector.broadcast %c1_i32 : i32 to vector<8x128xi32>
    %44 = arith.andi %21, %43 : vector<8x128xi32>
    %c0_i32 = arith.constant 0 : i32
    %45 = vector.broadcast %c0_i32 : i32 to vector<8x128xi32>
    %46 = arith.cmpi eq, %44, %45 : vector<8x128xi32>
    %c1_i32_7 = arith.constant 1 : i32
    %47 = vector.broadcast %c1_i32_7 : i32 to vector<8x128xi32>
    %48 = arith.andi %42, %47 : vector<8x128xi32>
    %c0_i32_8 = arith.constant 0 : i32
    %49 = vector.broadcast %c0_i32_8 : i32 to vector<8x128xi32>
    %50 = arith.cmpi eq, %48, %49 : vector<8x128xi32>
    %c0_9 = arith.constant 0 : index
    %c0_10 = arith.constant 0 : index
    %51 = vector.load %arg2[%c0_9, %c0_10] : memref<8x37xf32, #tpu.memory_space<vmem>>, vector<8x37xf32>
    %52 = arith.truncf %51 : vector<8x37xf32> to vector<8x37xbf16>
    %c0_11 = arith.constant 0 : index
    %c0_12 = arith.constant 0 : index
    %53 = vector.load %arg3[%c0_11, %c0_12] : memref<37x128xbf16, #tpu.memory_space<vmem>>, vector<37x128xbf16>
    %cst = arith.constant dense<0.000000e+00> : vector<8x128xf32>
    %54 = tpu.matmul %52, %53, %cst {dimension_numbers = #tpu.dot_dimension_numbers<[1], [0], [0], [1], [0, 0, 1, 1], [], []>} : vector<8x37xbf16>, vector<37x128xbf16>, vector<8x128xf32> -> vector<8x128xf32>
    %c0_13 = arith.constant 0 : index
    %c0_14 = arith.constant 0 : index
    %55 = vector.load %arg4[%c0_13, %c0_14] : memref<1x128xf32, #tpu.memory_space<vmem>>, vector<1x128xf32>
    %56 = vector.broadcast %55 : vector<1x128xf32> to vector<8x128xf32>
    %57 = arith.addf %54, %56 : vector<8x128xf32>
    %cst_15 = arith.constant 0.000000e+00 : f32
    %58 = vector.broadcast %cst_15 : f32 to vector<8x128xf32>
    %59 = arith.maximumf %57, %58 : vector<8x128xf32>
    %cst_16 = arith.constant 0.000000e+00 : f32
    %60 = vector.broadcast %cst_16 : f32 to vector<8x128xf32>
    %61 = arith.select %46, %59, %60 : vector<8x128xi1>, vector<8x128xf32>
    %62 = arith.truncf %61 : vector<8x128xf32> to vector<8x128xbf16>
    %c0_17 = arith.constant 0 : index
    %c0_18 = arith.constant 0 : index
    %63 = vector.load %arg5[%c0_17, %c0_18] : memref<128x128xbf16, #tpu.memory_space<vmem>>, vector<128x128xbf16>
    %cst_19 = arith.constant dense<0.000000e+00> : vector<8x128xf32>
    %64 = tpu.matmul %62, %63, %cst_19 {dimension_numbers = #tpu.dot_dimension_numbers<[1], [0], [0], [1], [0, 0, 1, 1], [], []>} : vector<8x128xbf16>, vector<128x128xbf16>, vector<8x128xf32> -> vector<8x128xf32>
    %c0_20 = arith.constant 0 : index
    %c0_21 = arith.constant 0 : index
    %65 = vector.load %arg6[%c0_20, %c0_21] : memref<1x128xf32, #tpu.memory_space<vmem>>, vector<1x128xf32>
    %66 = vector.broadcast %65 : vector<1x128xf32> to vector<8x128xf32>
    %67 = arith.addf %64, %66 : vector<8x128xf32>
    %cst_22 = arith.constant 0.000000e+00 : f32
    %68 = vector.broadcast %cst_22 : f32 to vector<8x128xf32>
    %69 = arith.maximumf %67, %68 : vector<8x128xf32>
    %cst_23 = arith.constant 0.000000e+00 : f32
    %70 = vector.broadcast %cst_23 : f32 to vector<8x128xf32>
    %71 = arith.select %50, %69, %70 : vector<8x128xi1>, vector<8x128xf32>
    %72 = arith.truncf %71 : vector<8x128xf32> to vector<8x128xbf16>
    %c0_24 = arith.constant 0 : index
    %c0_25 = arith.constant 0 : index
    %73 = vector.load %arg7[%c0_24, %c0_25] : memref<128x4xbf16, #tpu.memory_space<vmem>>, vector<128x4xbf16>
    %cst_26 = arith.constant dense<0.000000e+00> : vector<8x4xf32>
    %74 = tpu.matmul %72, %73, %cst_26 {dimension_numbers = #tpu.dot_dimension_numbers<[1], [0], [0], [1], [0, 0, 1, 1], [], []>} : vector<8x128xbf16>, vector<128x4xbf16>, vector<8x4xf32> -> vector<8x4xf32>
    %c0_27 = arith.constant 0 : index
    %c0_28 = arith.constant 0 : index
    %75 = vector.load %arg8[%c0_27, %c0_28] : memref<1x4xf32, #tpu.memory_space<vmem>>, vector<1x4xf32>
    %76 = vector.broadcast %75 : vector<1x4xf32> to vector<8x4xf32>
    %77 = arith.addf %74, %76 : vector<8x4xf32>
    %c0_29 = arith.constant 0 : index
    %c0_30 = arith.constant 0 : index
    %78 = vector.load %arg9[%c0_29, %c0_30] : memref<8x4xf32, #tpu.memory_space<vmem>>, vector<8x4xf32>
    tpu.vector_store %arg9[%c0_29, %c0_30], %77 {strides = array<i32>} : memref<8x4xf32, #tpu.memory_space<vmem>>, vector<8x4xf32>,
    return
  }
  func.func @transform_0(%arg0: i32, %arg1: memref<1xi32, #tpu.memory_space<smem>>) -> (i32, i32) {
    %c0_i32 = arith.constant 0 : i32
    %c0_i32_0 = arith.constant 0 : i32
    return %arg0, %c0_i32 : i32, i32
  }
  func.func @transform_1(%arg0: i32, %arg1: memref<1xi32, #tpu.memory_space<smem>>) -> (i32, i32) {
    %c0_i32 = arith.constant 0 : i32
    %c0_i32_0 = arith.constant 0 : i32
    %c0_i32_1 = arith.constant 0 : i32
    return %c0_i32, %c0_i32_0 : i32, i32
  }
  func.func @transform_2(%arg0: i32, %arg1: memref<1xi32, #tpu.memory_space<smem>>) -> (i32, i32) {
    %c0_i32 = arith.constant 0 : i32
    %c0_i32_0 = arith.constant 0 : i32
    %c0_i32_1 = arith.constant 0 : i32
    return %c0_i32, %c0_i32_0 : i32, i32
  }
  func.func @transform_3(%arg0: i32, %arg1: memref<1xi32, #tpu.memory_space<smem>>) -> (i32, i32) {
    %c0_i32 = arith.constant 0 : i32
    %c0_i32_0 = arith.constant 0 : i32
    %c0_i32_1 = arith.constant 0 : i32
    return %c0_i32, %c0_i32_0 : i32, i32
  }
  func.func @transform_4(%arg0: i32, %arg1: memref<1xi32, #tpu.memory_space<smem>>) -> (i32, i32) {
    %c0_i32 = arith.constant 0 : i32
    %c0_i32_0 = arith.constant 0 : i32
    %c0_i32_1 = arith.constant 0 : i32
    return %c0_i32, %c0_i32_0 : i32, i32
  }
  func.func @transform_5(%arg0: i32, %arg1: memref<1xi32, #tpu.memory_space<smem>>) -> (i32, i32) {
    %c0_i32 = arith.constant 0 : i32
    %c0_i32_0 = arith.constant 0 : i32
    %c0_i32_1 = arith.constant 0 : i32
    return %c0_i32, %c0_i32_0 : i32, i32
  }
  func.func @transform_6(%arg0: i32, %arg1: memref<1xi32, #tpu.memory_space<smem>>) -> (i32, i32) {
    %c0_i32 = arith.constant 0 : i32
    %c0_i32_0 = arith.constant 0 : i32
    %c0_i32_1 = arith.constant 0 : i32
    return %c0_i32, %c0_i32_0 : i32, i32
  }
  func.func @transform_7(%arg0: i32, %arg1: memref<1xi32, #tpu.memory_space<smem>>) -> (i32, i32) {
    %c0_i32 = arith.constant 0 : i32
    %c0_i32_0 = arith.constant 0 : i32
    return %arg0, %c0_i32 : i32, i32
  }
}

</mosaic_0001>

<bundles_post_ra>
// kernel: tpu_custom_call.1
= control target key start
LH: loop header
LB: loop body
LE: loop exit
PB: predicated region body
PF: predicated region fallthrough
CT: control target
= control target key end

     0   :  { %14 = vsyncpa [#allocation5], 0  ;;  %s539_s27 = smov [#allocation4]   ;;  %s693_s0 = inlined_call_operand.<no memory space> [shape: s32[1], index: 0, kind: input, shape index: {}]   ;;  %s694_s1 = inlined_call_operand.vmem [shape: f32[8,37], index: 1, kind: input, shape index: {}]   ;;  %s695_s2 = inlined_call_operand.hbm [shape: bf16[37,128], index: 2, kind: input, shape index: {}]   ;;  %s696_s3 = inlined_call_operand.vmem [shape: f32[1,128], index: 3, kind: input, shape index: {}]   ;;  %s697_s4 = inlined_call_operand.vmem [shape: bf16[128,128], index: 4, kind: input, shape index: {}]   ;;  %s698_s5 = inlined_call_operand.vmem [shape: f32[1,128], index: 5, kind: input, shape index: {}]   ;;  %s699_s6 = inlined_call_operand.vmem [shape: bf16[128,4], index: 6, kind: input, shape index: {}]   ;;  %s700_s7 = inlined_call_operand.vmem [shape: f32[1,4], index: 7, kind: input, shape index: {}]   ;;  %s701_s8 = inlined_call_operand.vmem [shape: f32[8,4], index: 8, kind: output, shape index: {}]  }
   0x1   :  { %s22_s28 = sshll.u32 %s539_s27, 4  ;;  %s515_s9 = scalar_lea.hbm %s695_s2, 320  ;;  %s23_s28 = int_to_ptr.vmem [resolvable:$true] %s22_s28 }
   0x2   :  { %p516_p0 = scmp.ne.s32.totalorder %s695_s2, %s515_s9  ;;  %p519_p1 = scmp.lt.u32.totalorder %s515_s9, %s695_s2 }
   0x4   :  { %p521_p2 = pnand %p519_p1, %p516_p0 }
   0x6   :  { %524 = shalt.err (!%p521_p2)
}
   0x7   :  { %s525_s14 = scalar_lea.vmem %s23_s28, 320  ;;  %p530_p4 = scmp.lt.s32.totalorder %s23_s28, %s23_s28 }
   0x8   :  { %p526_p3 = scmp.ne.s32.totalorder %s23_s28, %s525_s14  ;;  %p531_p5 = scmp.lt.s32.totalorder %s525_s14, %s525_s14 }
   0xa   :  { %p532_p6 = por %p531_p5, %p530_p4 }
   0xc   :  { %p533_p7 = pnand %p532_p6, %p526_p3 }
   0xe   :  { %536 = shalt.err (!%p533_p7)
}
   0xf   :  { %s540_s15 = smov 64   ;;  %s541_s16 = smov 4  }
  0x10   :  { %28 = dma.hbm_to_vmem [thread:$0]  %s695_s2, 320, %s23_s28, [#allocation5], %s540_s15, %s540_s15, %s541_s16  }
  0x11   :  { %537 = dma.done.wait [#allocation5], 320  }
  0x12   :  { %538 = vsyncadd [#allocation5], 4294966976  ;;  %v542_v0 = vmov 0.0   ;;  %vm543_vm0 = vmmov 0   ;;  %vm107_vm1 = vcmask 1041408   ;;  %vm108_vm2 = vcmask 1042432  }
  0x13   :  { %440 = vmatprep.subr.bf16.mxu0 %v542_v0  ;;  %450 = vmatprep.subr.bf16.mxu1 %v542_v0  ;;  %v496_v1 = vld [vmem:[#allocation4] sm:$0xff]   ;;  %v544_v2 = vmov 65535   ;;  %v497_v4 = vld [vmem:[#allocation4 + $0x8] sm:$0xff]   ;;  %v498_v5 = vld [vmem:[#allocation4 + $0x10] ss:$0 sps:$4 sm:$0x77]   ;;  %v44_v24 = vlaneseq }
  0x14   :  { %446 = vmatprep.mubr.msk.bf16.mxu0 %vm543_vm0, %v542_v0  ;;  %466 = vmatprep.mubr.msk.bf16.mxu1 %vm543_vm0, %v542_v0  ;;  %v109_v3 = vsel %vm107_vm1, 4294967295, %v544_v2  ;;  %v499_v7 = vld [vmem:[%s697_s4] sm:$0xff]   ;;  %v500_v8 = vld [vmem:[%s697_s4 + $0x8] sm:$0xff]   ;;  %vm103_vm3 = vcmask 302080   ;;  %v501_v12 = vld [vmem:[%s697_s4 + $0x10] sm:$0xff]   ;;  %vm382_vm8 = vcmask 31744  }
  0x15   :  { %441 = vmatpush3.bf16.msra.mxu0 %v496_v1  ;;  %v110_v6 = vsel %vm108_vm2, %v109_v3, 0  ;;  %451 = vmatpush3.bf16.msra.mxu1 %v499_v7  ;;  %v74_v10 = vld [vmem:[%s694_s1] sm:$0xff]  ;;  %v502_v13 = vld [vmem:[%s697_s4 + $0x18] sm:$0xff]   ;;  %v504_v15 = vld [vmem:[%s697_s4 + $0x28] sm:$0xff]   ;;  %v45_v25 = vshrl.u32 %v44_v24, 7  ;;  %v47_v26 = vand.u32 127, %v44_v24 }
  0x16   :  { %442 = vmatprep.subr.bf16.mxu0 %v542_v0  ;;  %v112_v9 = vand.u32 %v498_v5, %v110_v6  ;;  %452 = vmatprep.subr.bf16.mxu1 %v542_v0  ;;  %v75_v11 = vpack.c.bf16 %v74_v10, %v74_v10  ;;  %v503_v14 = vld [vmem:[%s697_s4 + $0x20] sm:$0xff]   ;;  %v505_v16 = vld [vmem:[%s697_s4 + $0x30] sm:$0xff]   ;;  %v506_v17 = vld [vmem:[%s697_s4 + $0x38] sm:$0xff]   ;;  %s48_s25 = smul.u32 2246822507, %s693_s0 }
  0x17   :  { %v507_v18 = vld [vmem:[%s699_s6] sm:$0xff]   ;;  %v508_v19 = vld [vmem:[%s699_s6 + $0x8] sm:$0xff]   ;;  %v509_v20 = vld [vmem:[%s699_s6 + $0x10] sm:$0xff]   ;;  %v52_v27 = vmul.u32 2654435769, %v45_v25 }
  0x18   :  { %v510_v21 = vld [vmem:[%s699_s6 + $0x18] sm:$0xff]   ;;  %v511_v22 = vld [vmem:[%s699_s6 + $0x20] sm:$0xff]   ;;  %v512_v23 = vld [vmem:[%s699_s6 + $0x28] sm:$0xff]   ;;  %v53_v28 = vmul.u32 2146121005, %v47_v26 }
  0x19   :  { %443 = vmatpush3.bf16.msra.mxu0 %v497_v4  ;;  %453 = vmatpush3.bf16.msra.mxu1 %v500_v8  ;;  %s51_s26 = sadd.s32 608135816, %s48_s25  ;;  %v389_v38 = vld [vmem:[%s696_s3] ss:$0 sm:$0xff]  ;;  %v513_v46 = vld [vmem:[%s699_s6 + $0x30] sm:$0xff]   ;;  %v514_v47 = vld [vmem:[%s699_s6 + $0x38] sm:$0xff]  }
  0x1a   :  { %444 = vmatprep.subr.bf16.mxu0 %v542_v0  ;;  %454 = vmatprep.subr.bf16.mxu1 %v542_v0  ;;  %v54_v29 = vxor.u32 %v53_v28, %v52_v27  ;;  %v55_v30 = vstv %s51_s26  ;;  %s62_s3 = sadd.s32 320440878, %s48_s25  ;;  %v394_v56 = vld [vmem:[%s698_s5] ss:$0 sm:$0xff] }
  0x1b   :  { %v63_v48 = vstv %s62_s3 }
  0x1c   :  { %v56_v31 = vxor.u32 %v55_v30, %v54_v29  ;;  %v64_v49 = vxor.u32 %v63_v48, %v54_v29 }
  0x1d   :  { %445 = vmatpush3.bf16.msra.mxu0 %v112_v9  ;;  %455 = vmatpush3.bf16.msra.mxu1 %v501_v12 }
  0x1e   :  { %470 = vmatprep.subr.bf16.mxu0 %v542_v0  ;;  %456 = vmatprep.subr.bf16.mxu1 %v542_v0  ;;  %v57_v32 = vshrl.u32 %v56_v31, 16  ;;  %v65_v50 = vshrl.u32 %v64_v49, 16 }
  0x20   :  { %447 = vmatmul.mubr.msk.bf16.vlgmr.msra.gmra.mrb[0].mxu0 %vm103_vm3, %v75_v11  ;;  %v58_v33 = vxor.u32 %v57_v32, %v56_v31  ;;  %v66_v51 = vxor.u32 %v65_v50, %v64_v49 }
  0x21   :  { %486 = vmatprep.mubr.msk.bf16.mxu0 %vm543_vm0, %v542_v0  ;;  %457 = vmatpush3.bf16.msra.mxu1 %v502_v13 }
  0x22   :  { %458 = vmatprep.subr.bf16.mxu1 %v542_v0  ;;  %471 = vmatpush3.bf16.msra.mxu0 %v507_v18  ;;  %v59_v34 = vmul.u32 73244475, %v58_v33  ;;  %v67_v52 = vmul.u32 73244475, %v66_v51 }
  0x23   :  { %472 = vmatprep.subr.bf16.mxu0 %v542_v0 }
  0x24   :  { %v60_v35 = vshrl.u32 %v59_v34, 15  ;;  %v68_v53 = vshrl.u32 %v67_v52, 15 }
  0x25   :  { %459 = vmatpush3.bf16.msra.mxu1 %v503_v14 }
  0x26   :  { %460 = vmatprep.subr.bf16.mxu1 %v542_v0  ;;  %473 = vmatpush3.bf16.msra.mxu0 %v508_v19  ;;  %v61_v36 = vxor.u32 %v60_v35, %v59_v34  ;;  %v69_v54 = vxor.u32 %v68_v53, %v67_v52 }
  0x27   :  { %474 = vmatprep.subr.bf16.mxu0 %v542_v0 }
  0x28   :  { %v70_v37 = vand.u32 1, %v61_v36  ;;  %v72_v55 = vand.u32 1, %v69_v54 }
  0x29   :  { %461 = vmatpush3.bf16.msra.mxu1 %v504_v15 }
  0x2a   :  { %462 = vmatprep.subr.bf16.mxu1 %v542_v0  ;;  %475 = vmatpush3.bf16.msra.mxu0 %v509_v20  ;;  %vm71_vm4 = vcmp.eq.s32.totalorder %v70_v37, 0  ;;  %vm73_vm6 = vcmp.eq.s32.totalorder %v72_v55, 0 }
  0x2b   :  { %476 = vmatprep.subr.bf16.mxu0 %v542_v0  ;;  %vm403_vm5 = vmpackc.low %vm71_vm4, %vm71_vm4 }
  0x2c   :  { %vm415_vm7 = vmpackc.low %vm73_vm6, %vm73_vm6 }
  0x2d   :  { %463 = vmatpush3.bf16.msra.mxu1 %v505_v16 }
  0x2e   :  { %464 = vmatprep.subr.bf16.mxu1 %v542_v0  ;;  %477 = vmatpush3.bf16.msra.mxu0 %v510_v21 }
  0x2f   :  { %478 = vmatprep.subr.bf16.mxu0 %v542_v0 }
  0x31   :  { %465 = vmatpush3.bf16.msra.mxu1 %v506_v17 }
  0x32   :  { %479 = vmatpush3.bf16.msra.mxu0 %v511_v22 }
  0x33   :  { %480 = vmatprep.subr.bf16.mxu0 %v542_v0 }
  0x36   :  { %481 = vmatpush3.bf16.msra.mxu0 %v512_v23 }
  0x37   :  { %482 = vmatprep.subr.bf16.mxu0 %v542_v0 }
  0x3a   :  { %483 = vmatpush3.bf16.msra.mxu0 %v513_v46 }
  0x3b   :  { %484 = vmatprep.subr.bf16.mxu0 %v542_v0  ;;  %v406_v0 = vld [vmem:[%s700_s7] ss:$0 sm:$0xff] }
  0x3e   :  { %485 = vmatpush3.bf16.msra.mxu0 %v514_v47 }
  0xf3   :  { %v148_v39 = vpop.f32.mrb[0].mxu0 }
  0xf4   :  { %v149_v40 = vadd.f32 %v389_v38, %v148_v39  ;;  %v448_v41 = vpop.f32.mrb[1].mxu0 }
  0xf5   :  { %v151_v42 = vpop.f32.mrb[2].mxu0 }
  0xf6   :  { %v154_v43 = vmax.f32 %v149_v40, 0.0  ;;  %v449_v44 = vpop.f32.mrb[3].mxu0 }
  0xf8   :  { %v404_v45 = vpack.c.bf16 %v154_v43, %v154_v43 }
  0xfa   :  { %467 = vmatmul.mubr.msk.bf16.vlgmr.msra.gmra.mrb[0].mxu1 %vm403_vm5, %v404_v45 }
 0x1cd   :  { %v262_v57 = vpop.f32.mrb[0].mxu1 }
 0x1ce   :  { %v263_v58 = vadd.f32 %v394_v56, %v262_v57  ;;  %v468_v59 = vpop.f32.mrb[1].mxu1 }
 0x1cf   :  { %v265_v60 = vpop.f32.mrb[2].mxu1 }
 0x1d0   :  { %v268_v61 = vmax.f32 %v263_v58, 0.0  ;;  %v469_v62 = vpop.f32.mrb[3].mxu1 }
 0x1d2   :  { %v416_v63 = vpack.c.bf16 %v268_v61, %v268_v61 }
 0x1d4   :  { %487 = vmatmul.mubr.msk.bf16.vlgmr.msra.gmra.mrb[4].mxu0 %vm415_vm7, %v416_v63 }
 0x2a7   :  { %v376_v1 = vpop.f32.mrb[4].mxu0 }
 0x2a8   :  { %v377_v2 = vadd.f32 %v406_v0, %v376_v1  ;;  %v488_v3 = vpop.f32.mrb[5].mxu0 }
 0x2a9   :  { %v379_v4 = vpop.f32.mrb[6].mxu0 }
 0x2aa   :  { %383 = vst.msk [vmem:[%s701_s8] sm:$0xff] %vm382_vm8, %v377_v2  ;;  %v489_v5 = vpop.f32.mrb[7].mxu0 }
 0x2ab   :  { %388 = vsyncpa [#allocation5], 1 }

</bundles_post_ra>
